<compile_context>
chip_gen: v5e
topology: v5e:2x2
jax: 0.10.0
libtpu: 0.0.40
codegen_flags: <defaults>
</compile_context>

<pallas_src>
import functools

import jax
import jax.numpy as jnp
from jax import lax
from jax.experimental import pallas as pl
from jax.experimental.pallas import tpu as pltpu


# ----------------------------------------------------------------------------
# tile pickers
# ----------------------------------------------------------------------------
def _pick_tile(dim, target, align):
    """Tile for an output-parallel dim (M or N): prefer the largest aligned
    divisor <= target; otherwise return an aligned tile and let the cdiv grid
    handle the (masked) ragged edge block."""
    if dim <= target:
        return dim
    t = max(align, (target // align) * align)
    best = t
    while t >= align:
        if dim % t == 0:
            return t              # exact divisor: no ragged edge
        t -= align
    return best                   # cdiv grid; Pallas masks the edge block


def _pick_tile_exact(dim, target, align):
    """Tile for the contraction (K) dim: must divide exactly (garbage in a
    padded K block would corrupt the accumulation)."""
    if dim <= target:
        return dim
    t = max(align, (target // align) * align)
    while t >= align:
        if dim % t == 0:
            return t
        t -= align
    # No aligned divisor <= target.  For this module K is the model width
    # (<= a few thousand), so a full-K block still fits VMEM comfortably.
    return dim


# ----------------------------------------------------------------------------
# Kernel 1: tiled dense projection  y = x @ Wt + b   (Wt is (K, N))
# ----------------------------------------------------------------------------
def _linear_kernel(x_ref, wt_ref, b_ref, o_ref, acc_ref):
    k = pl.program_id(2)

    @pl.when(k == 0)
    def _init():
        acc_ref[...] = jnp.zeros_like(acc_ref)

    acc_ref[...] += jnp.dot(x_ref[...], wt_ref[...],
                            preferred_element_type=jnp.float32)

    @pl.when(k == pl.num_programs(2) - 1)
    def _finalize():
        o_ref[...] = (acc_ref[...] + b_ref[...].astype(jnp.float32)
                      ).astype(o_ref.dtype)


def linear(x2d, wt, b2, *, tm=1024, tn=512, tk=512):
    """x2d: (M, K); wt: (K, N) [already transposed]; b2: (1, N)."""
    M, K = x2d.shape
    Kw, N = wt.shape
    assert Kw == K and b2.shape == (1, N)
    tm = _pick_tile(M, tm, 8)
    tn = _pick_tile(N, tn, 128)
    tk = _pick_tile_exact(K, tk, 128)
    assert K % tk == 0
    grid = (pl.cdiv(M, tm), pl.cdiv(N, tn), K // tk)
    return pl.pallas_call(
        _linear_kernel,
        out_shape=jax.ShapeDtypeStruct((M, N), x2d.dtype),
        grid_spec=pltpu.PrefetchScalarGridSpec(
            num_scalar_prefetch=0,
            grid=grid,
            in_specs=[
                pl.BlockSpec((tm, tk), lambda i, j, k: (i, k)),
                pl.BlockSpec((tk, tn), lambda i, j, k: (k, j)),
                pl.BlockSpec((1, tn), lambda i, j, k: (0, j)),
            ],
            out_specs=pl.BlockSpec((tm, tn), lambda i, j, k: (i, j)),
            scratch_shapes=[pltpu.VMEM((tm, tn), jnp.float32)],
        ),
        compiler_params=pltpu.CompilerParams(
            dimension_semantics=("parallel", "parallel", "arbitrary")),
    )(x2d, wt, b2)


# ----------------------------------------------------------------------------
# Kernel 2: attention.
#   qkv block: (1, S, 3E) laid out as [q(E) | k(E) | v(E)], heads along lanes.
#   Each head's results are stored immediately (nothing carried across heads).
# ----------------------------------------------------------------------------
def _compute_head(qkv_ref, o_ref, w_ref, h, num_heads, head_dim, scale):
    """Compute one head (static index h), store its output slice (and probs)."""
    embed_dim = num_heads * head_dim
    lo = h * head_dim
    # Scale q (S*Dh multiplies) instead of the (S, S) scores.
    q_h = qkv_ref[0, :, lo:lo + head_dim] * scale                       # (S, Dh)
    k_h = qkv_ref[0, :, embed_dim + lo:embed_dim + lo + head_dim]       # (S, Dh)
    v_h = qkv_ref[0, :, 2 * embed_dim + lo:2 * embed_dim + lo + head_dim]

    # QK^T without materializing k_h.T: contract the Dh axis of both operands.
    scores = lax.dot_general(q_h, k_h,
                             dimension_numbers=(((1,), (1,)), ((), ())),
                             preferred_element_type=jnp.float32)        # (S, S)

    # softmax in float32 (matches torch softmax(..., dtype=float32));
    # exact reciprocal since the weights may be returned to the caller.
    m = jnp.max(scores, axis=-1, keepdims=True)
    e = jnp.exp(scores - m)
    denom = jnp.sum(e, axis=-1, keepdims=True)
    p = e * (1.0 / denom)                                               # (S, S)

    # dropout(p, training=False) is identity.
    out_h = jnp.dot(p.astype(v_h.dtype), v_h,
                    preferred_element_type=jnp.float32)                 # (S, Dh)

    # Immediate stores: nothing from this head stays live afterwards.
    o_ref[0, :, lo:lo + head_dim] = out_h.astype(o_ref.dtype)
    if w_ref is not None:
        w_ref[0, 0, :, :] = p.astype(w_ref.dtype)


def _attn_kernel(qkv_ref, o_ref, *, num_heads, head_dim, scale):
    # grid = (B,): all heads of one batch element, stored as they complete.
    for h in range(num_heads):
        _compute_head(qkv_ref, o_ref, None, h, num_heads, head_dim, scale)


def _attn_kernel_w(qkv_ref, o_ref, w_ref, *, num_heads, head_dim, scale):
    # grid = (B, H): one head per grid step so the weights block is (1,1,S,S).
    # Static pl.when dispatch keeps all lane offsets static; only the selected
    # branch executes at runtime.  qkv / o blocks are resident across the head
    # axis (same block index), so they are DMA'd once per batch element.
    hid = pl.program_id(1)
    for h in range(num_heads):
        @pl.when(hid == h)
        def _(h=h):
            _compute_head(qkv_ref, o_ref, w_ref, h, num_heads, head_dim, scale)


def attention(qkv3d, num_heads, scale, *, return_weights=False):
    """qkv3d: (B, S, 3E).  Returns (attn_out (B,S,E), attn_weights|None)."""
    B, S, three_e = qkv3d.shape
    E = three_e // 3
    Dh = E // num_heads
    o_shape = jax.ShapeDtypeStruct((B, S, E), qkv3d.dtype)

    if not return_weights:
        out = pl.pallas_call(
            functools.partial(_attn_kernel, num_heads=num_heads,
                              head_dim=Dh, scale=scale),
            out_shape=o_shape,
            grid_spec=pltpu.PrefetchScalarGridSpec(
                num_scalar_prefetch=0, grid=(B,),
                in_specs=[pl.BlockSpec((1, S, three_e), lambda b: (b, 0, 0))],
                out_specs=pl.BlockSpec((1, S, E), lambda b: (b, 0, 0))),
            compiler_params=pltpu.CompilerParams(
                dimension_semantics=("parallel",)),
        )(qkv3d)
        return out, None

    out, w = pl.pallas_call(
        functools.partial(_attn_kernel_w, num_heads=num_heads,
                          head_dim=Dh, scale=scale),
        out_shape=(o_shape,
                   jax.ShapeDtypeStruct((B, num_heads, S, S), qkv3d.dtype)),
        grid_spec=pltpu.PrefetchScalarGridSpec(
            num_scalar_prefetch=0, grid=(B, num_heads),
            in_specs=[pl.BlockSpec((1, S, three_e), lambda b, h: (b, 0, 0))],
            out_specs=(pl.BlockSpec((1, S, E), lambda b, h: (b, 0, 0)),
                       pl.BlockSpec((1, 1, S, S), lambda b, h: (b, h, 0, 0)))),
        compiler_params=pltpu.CompilerParams(
            dimension_semantics=("parallel", "arbitrary")),
    )(qkv3d)
    return out, w


# ----------------------------------------------------------------------------
# SiglipAttention forward
# ----------------------------------------------------------------------------
def prepare_params(params):
    """One-time weight prep: fuse q/k/v and pre-transpose to (in, out) layout."""
    w_qkv = jnp.concatenate(
        [params["q_w"], params["k_w"], params["v_w"]], axis=0)   # (3E, E)
    b_qkv = jnp.concatenate([params["q_b"], params["k_b"], params["v_b"]])
    return {
        "qkv_wt": jnp.transpose(w_qkv),            # (E, 3E): cols = [q | k | v]
        "qkv_b": b_qkv.reshape(1, -1),             # (1, 3E)
        "o_wt": jnp.transpose(params["o_w"]),      # (E, E)
        "o_b": params["o_b"].reshape(1, -1),       # (1, E)
    }


@functools.partial(jax.jit, static_argnames=("num_heads", "return_weights"))
def siglip_attention(hidden_states, prepared, num_heads, return_weights=False):
    """Pass return_weights=True to reproduce the PyTorch module's full return
    (attn_output, attn_weights); the default skips the B*H*S*S writeback."""
    B, S, E = hidden_states.shape
    head_dim = E // num_heads
    scale = head_dim ** (-0.5)

    x2d = hidden_states.reshape(B * S, E)

    # Fused q/k/v projection: one pass over the activations.
    qkv2d = linear(x2d, prepared["qkv_wt"], prepared["qkv_b"])
    qkv3d = qkv2d.reshape(B, S, 3 * E)             # contiguous reshape, no copy

    attn_out, attn_weights = attention(qkv3d, num_heads, scale,
                                       return_weights=return_weights)

    # attn_out is already (B, S, E): no HBM transpose before the out proj.
    out2d = linear(attn_out.reshape(B * S, E), prepared["o_wt"], prepared["o_b"])
    return out2d.reshape(B, S, E), attn_weights


# ----------------------------------------------------------------------------
# Plain-JAX reference mirroring the PyTorch forward
# ----------------------------------------------------------------------------
def _reference(hidden_states, params, num_heads):
    B, S, E = hidden_states.shape
    head_dim = E // num_heads
    scale = head_dim ** (-0.5)
    q = hidden_states @ params["q_w"].T + params["q_b"]
    k = hidden_states @ params["k_w"].T + params["k_b"]
    v = hidden_states @ params["v_w"].T + params["v_b"]

    def sh(t):
        return t.reshape(B, S, num_heads, head_dim).transpose(0, 2, 1, 3)

    q, k, v = sh(q), sh(k), sh(v)
    w = jnp.einsum("bhqd,bhkd->bhqk", q, k) * scale
    w = jax.nn.softmax(w.astype(jnp.float32), axis=-1).astype(q.dtype)
    o = jnp.einsum("bhqk,bhkd->bhqd", w, v)
    o = o.transpose(0, 2, 1, 3).reshape(B, S, E)
    o = o @ params["o_w"].T + params["o_b"]
    return o, w


if __name__ == "__main__":
    # Small config consistent with SiglipAttention
    batch, seq, hidden, num_heads = 2, 8, 32, 4

    key = jax.random.PRNGKey(0)
    keys = jax.random.split(key, 9)
    scale_init = 0.02

    params = {
        "q_w": scale_init * jax.random.normal(keys[0], (hidden, hidden), jnp.float32),
        "q_b": scale_init * jax.random.normal(keys[1], (hidden,), jnp.float32),
        "k_w": scale_init * jax.random.normal(keys[2], (hidden, hidden), jnp.float32),
        "k_b": scale_init * jax.random.normal(keys[3], (hidden,), jnp.float32),
        "v_w": scale_init * jax.random.normal(keys[4], (hidden, hidden), jnp.float32),
        "v_b": scale_init * jax.random.normal(keys[5], (hidden,), jnp.float32),
        "o_w": scale_init * jax.random.normal(keys[6], (hidden, hidden), jnp.float32),
        "o_b": scale_init * jax.random.normal(keys[7], (hidden,), jnp.float32),
    }
    hidden_states = jax.random.normal(keys[8], (batch, seq, hidden), jnp.float32)

    prepared = prepare_params(params)

    # Full module semantics (returns attention weights).
    out, attn_w = siglip_attention(hidden_states, prepared, num_heads,
                                   return_weights=True)
    out = jax.block_until_ready(out)
    attn_w = jax.block_until_ready(attn_w)

    # Fast default path (no weights writeback).
    out_nw, none_w = siglip_attention(hidden_states, prepared, num_heads)
    out_nw = jax.block_until_ready(out_nw)
    assert none_w is None

    ref_out, ref_w = _reference(hidden_states, params, num_heads)
    assert out.shape == (batch, seq, hidden)
    assert attn_w.shape == (batch, num_heads, seq, seq)
    assert jnp.allclose(out, ref_out, atol=2e-4, rtol=2e-4), \
        float(jnp.max(jnp.abs(out - ref_out)))
    assert jnp.allclose(attn_w, ref_w, atol=2e-4, rtol=2e-4), \
        float(jnp.max(jnp.abs(attn_w - ref_w)))
    assert jnp.allclose(out_nw, ref_out, atol=2e-4, rtol=2e-4), \
        float(jnp.max(jnp.abs(out_nw - ref_out)))

    print("KERNEL_OK")
</pallas_src>

<mosaic_0001>
module attributes {stable_mosaic.version = 11 : i64} {
  func.func @_attn_kernel_w(%arg0: i32, %arg1: i32, %arg2: memref<1x8x96xf32, #tpu.memory_space<vmem>>, %arg3: memref<1x8x32xf32, #tpu.memory_space<vmem>>, %arg4: memref<1x1x8x8xf32, #tpu.memory_space<vmem>>) attributes {dimension_semantics = [#tpu.dimension_semantics<parallel>, #tpu.dimension_semantics<arbitrary>], iteration_bounds = array<i64: 2, 4>, scalar_prefetch = 0 : i64, scratch_operands = 0 : i64, tpu.core_type = #tpu.core_type<tc>, window_params = [{transform_indices = @transform_0, window_bounds = array<i64: 1, 8, 96>}, {transform_indices = @transform_1, window_bounds = array<i64: 1, 8, 32>}, {transform_indices = @transform_2, window_bounds = array<i64: 1, 1, 8, 8>}]} {
    %c0_i32 = arith.constant 0 : i32
    %0 = arith.cmpi eq, %arg1, %c0_i32 : i32
    %1 = arith.extui %0 : i1 to i32
    %c0_i32_0 = arith.constant 0 : i32
    %2 = arith.cmpi ne, %1, %c0_i32_0 : i32
    scf.if %2 {
      %c0 = arith.constant 0 : index
      %c0_4 = arith.constant 0 : index
      %c0_5 = arith.constant 0 : index
      %12 = vector.load %arg2[%c0, %c0_4, %c0_5] : memref<1x8x96xf32, #tpu.memory_space<vmem>>, vector<1x8x8xf32>
      %13 = vector.shape_cast %12 : vector<1x8x8xf32> to vector<8x8xf32>
      %cst = arith.constant 0.353553385 : f32
      %14 = vector.broadcast %cst : f32 to vector<8x8xf32>
      %15 = arith.mulf %13, %14 : vector<8x8xf32>
      %c0_6 = arith.constant 0 : index
      %c0_7 = arith.constant 0 : index
      %c32 = arith.constant 32 : index
      %16 = vector.load %arg2[%c0_6, %c0_7, %c32] : memref<1x8x96xf32, #tpu.memory_space<vmem>>, vector<1x8x8xf32>
      %17 = vector.shape_cast %16 : vector<1x8x8xf32> to vector<8x8xf32>
      %c0_8 = arith.constant 0 : index
      %c0_9 = arith.constant 0 : index
      %c64 = arith.constant 64 : index
      %18 = vector.load %arg2[%c0_8, %c0_9, %c64] : memref<1x8x96xf32, #tpu.memory_space<vmem>>, vector<1x8x8xf32>
      %19 = vector.shape_cast %18 : vector<1x8x8xf32> to vector<8x8xf32>
      %cst_10 = arith.constant dense<0.000000e+00> : vector<8x8xf32>
      %20 = tpu.matmul %15, %17, %cst_10 {dimension_numbers = #tpu.dot_dimension_numbers<[1], [1], [0], [0], [0, 0, 1, 0], [], []>} : vector<8x8xf32>, vector<8x8xf32>, vector<8x8xf32> -> vector<8x8xf32>
      %cst_11 = arith.constant dense<0xFF800000> : vector<8xf32>
      %21 = vector.multi_reduction <maximumf>, %20, %cst_11 [1] : vector<8x8xf32> to vector<8xf32>
      %22 = vector.shape_cast %21 : vector<8xf32> to vector<8x1xf32>
      %23 = vector.broadcast %22 : vector<8x1xf32> to vector<8x8xf32>
      %24 = arith.subf %20, %23 : vector<8x8xf32>
      %25 = math.exp %24 : vector<8x8xf32>
      %cst_12 = arith.constant dense<0.000000e+00> : vector<8xf32>
      %26 = vector.multi_reduction <add>, %25, %cst_12 [1] : vector<8x8xf32> to vector<8xf32>
      %27 = vector.shape_cast %26 : vector<8xf32> to vector<8x1xf32>
      %cst_13 = arith.constant 1.000000e+00 : f32
      %28 = vector.broadcast %cst_13 : f32 to vector<8x1xf32>
      %29 = arith.divf %28, %27 : vector<8x1xf32>
      %30 = vector.broadcast %29 : vector<8x1xf32> to vector<8x8xf32>
      %31 = arith.mulf %25, %30 : vector<8x8xf32>
      %cst_14 = arith.constant dense<0.000000e+00> : vector<8x8xf32>
      %32 = tpu.matmul %31, %19, %cst_14 {dimension_numbers = #tpu.dot_dimension_numbers<[1], [0], [0], [1], [0, 0, 1, 1], [], []>} : vector<8x8xf32>, vector<8x8xf32>, vector<8x8xf32> -> vector<8x8xf32>
      %c0_15 = arith.constant 0 : index
      %c0_16 = arith.constant 0 : index
      %c0_17 = arith.constant 0 : index
      %33 = vector.load %arg3[%c0_15, %c0_16, %c0_17] : memref<1x8x32xf32, #tpu.memory_space<vmem>>, vector<1x8x8xf32>
      %34 = vector.shape_cast %33 : vector<1x8x8xf32> to vector<8x8xf32>
      %35 = vector.shape_cast %32 : vector<8x8xf32> to vector<1x8x8xf32>
      tpu.vector_store %arg3[%c0_15, %c0_16, %c0_17], %35 {strides = array<i32>} : memref<1x8x32xf32, #tpu.memory_space<vmem>>, vector<1x8x8xf32>,
      %c0_18 = arith.constant 0 : index
      %c0_19 = arith.constant 0 : index
      %c0_20 = arith.constant 0 : index
      %c0_21 = arith.constant 0 : index
      %36 = vector.load %arg4[%c0_18, %c0_19, %c0_20, %c0_21] : memref<1x1x8x8xf32, #tpu.memory_space<vmem>>, vector<1x1x8x8xf32>
      %37 = vector.shape_cast %36 : vector<1x1x8x8xf32> to vector<8x8xf32>
      %38 = vector.shape_cast %31 : vector<8x8xf32> to vector<1x1x8x8xf32>
      tpu.vector_store %arg4[%c0_18, %c0_19, %c0_20, %c0_21], %38 {strides = array<i32>} : memref<1x1x8x8xf32, #tpu.memory_space<vmem>>, vector<1x1x8x8xf32>,
    } else {
    }
    %c1_i32 = arith.constant 1 : i32
    %3 = arith.cmpi eq, %arg1, %c1_i32 : i32
    %4 = arith.extui %3 : i1 to i32
    %c0_i32_1 = arith.constant 0 : i32
    %5 = arith.cmpi ne, %4, %c0_i32_1 : i32
    scf.if %5 {
      %c0 = arith.constant 0 : index
      %c0_4 = arith.constant 0 : index
      %c8 = arith.constant 8 : index
      %12 = vector.load %arg2[%c0, %c0_4, %c8] : memref<1x8x96xf32, #tpu.memory_space<vmem>>, vector<1x8x8xf32>
      %13 = vector.shape_cast %12 : vector<1x8x8xf32> to vector<8x8xf32>
      %cst = arith.constant 0.353553385 : f32
      %14 = vector.broadcast %cst : f32 to vector<8x8xf32>
      %15 = arith.mulf %13, %14 : vector<8x8xf32>
      %c0_5 = arith.constant 0 : index
      %c0_6 = arith.constant 0 : index
      %c40 = arith.constant 40 : index
      %16 = vector.load %arg2[%c0_5, %c0_6, %c40] : memref<1x8x96xf32, #tpu.memory_space<vmem>>, vector<1x8x8xf32>
      %17 = vector.shape_cast %16 : vector<1x8x8xf32> to vector<8x8xf32>
      %c0_7 = arith.constant 0 : index
      %c0_8 = arith.constant 0 : index
      %c72 = arith.constant 72 : index
      %18 = vector.load %arg2[%c0_7, %c0_8, %c72] : memref<1x8x96xf32, #tpu.memory_space<vmem>>, vector<1x8x8xf32>
      %19 = vector.shape_cast %18 : vector<1x8x8xf32> to vector<8x8xf32>
      %cst_9 = arith.constant dense<0.000000e+00> : vector<8x8xf32>
      %20 = tpu.matmul %15, %17, %cst_9 {dimension_numbers = #tpu.dot_dimension_numbers<[1], [1], [0], [0], [0, 0, 1, 0], [], []>} : vector<8x8xf32>, vector<8x8xf32>, vector<8x8xf32> -> vector<8x8xf32>
      %cst_10 = arith.constant dense<0xFF800000> : vector<8xf32>
      %21 = vector.multi_reduction <maximumf>, %20, %cst_10 [1] : vector<8x8xf32> to vector<8xf32>
      %22 = vector.shape_cast %21 : vector<8xf32> to vector<8x1xf32>
      %23 = vector.broadcast %22 : vector<8x1xf32> to vector<8x8xf32>
      %24 = arith.subf %20, %23 : vector<8x8xf32>
      %25 = math.exp %24 : vector<8x8xf32>
      %cst_11 = arith.constant dense<0.000000e+00> : vector<8xf32>
      %26 = vector.multi_reduction <add>, %25, %cst_11 [1] : vector<8x8xf32> to vector<8xf32>
      %27 = vector.shape_cast %26 : vector<8xf32> to vector<8x1xf32>
      %cst_12 = arith.constant 1.000000e+00 : f32
      %28 = vector.broadcast %cst_12 : f32 to vector<8x1xf32>
      %29 = arith.divf %28, %27 : vector<8x1xf32>
      %30 = vector.broadcast %29 : vector<8x1xf32> to vector<8x8xf32>
      %31 = arith.mulf %25, %30 : vector<8x8xf32>
      %cst_13 = arith.constant dense<0.000000e+00> : vector<8x8xf32>
      %32 = tpu.matmul %31, %19, %cst_13 {dimension_numbers = #tpu.dot_dimension_numbers<[1], [0], [0], [1], [0, 0, 1, 1], [], []>} : vector<8x8xf32>, vector<8x8xf32>, vector<8x8xf32> -> vector<8x8xf32>
      %c0_14 = arith.constant 0 : index
      %c0_15 = arith.constant 0 : index
      %c8_16 = arith.constant 8 : index
      %33 = vector.load %arg3[%c0_14, %c0_15, %c8_16] : memref<1x8x32xf32, #tpu.memory_space<vmem>>, vector<1x8x8xf32>
      %34 = vector.shape_cast %33 : vector<1x8x8xf32> to vector<8x8xf32>
      %35 = vector.shape_cast %32 : vector<8x8xf32> to vector<1x8x8xf32>
      tpu.vector_store %arg3[%c0_14, %c0_15, %c8_16], %35 {strides = array<i32>} : memref<1x8x32xf32, #tpu.memory_space<vmem>>, vector<1x8x8xf32>,
      %c0_17 = arith.constant 0 : index
      %c0_18 = arith.constant 0 : index
      %c0_19 = arith.constant 0 : index
      %c0_20 = arith.constant 0 : index
      %36 = vector.load %arg4[%c0_17, %c0_18, %c0_19, %c0_20] : memref<1x1x8x8xf32, #tpu.memory_space<vmem>>, vector<1x1x8x8xf32>
      %37 = vector.shape_cast %36 : vector<1x1x8x8xf32> to vector<8x8xf32>
      %38 = vector.shape_cast %31 : vector<8x8xf32> to vector<1x1x8x8xf32>
      tpu.vector_store %arg4[%c0_17, %c0_18, %c0_19, %c0_20], %38 {strides = array<i32>} : memref<1x1x8x8xf32, #tpu.memory_space<vmem>>, vector<1x1x8x8xf32>,
    } else {
    }
    %c2_i32 = arith.constant 2 : i32
    %6 = arith.cmpi eq, %arg1, %c2_i32 : i32
    %7 = arith.extui %6 : i1 to i32
    %c0_i32_2 = arith.constant 0 : i32
    %8 = arith.cmpi ne, %7, %c0_i32_2 : i32
    scf.if %8 {
      %c0 = arith.constant 0 : index
      %c0_4 = arith.constant 0 : index
      %c16 = arith.constant 16 : index
      %12 = vector.load %arg2[%c0, %c0_4, %c16] : memref<1x8x96xf32, #tpu.memory_space<vmem>>, vector<1x8x8xf32>
      %13 = vector.shape_cast %12 : vector<1x8x8xf32> to vector<8x8xf32>
      %cst = arith.constant 0.353553385 : f32
      %14 = vector.broadcast %cst : f32 to vector<8x8xf32>
      %15 = arith.mulf %13, %14 : vector<8x8xf32>
      %c0_5 = arith.constant 0 : index
      %c0_6 = arith.constant 0 : index
      %c48 = arith.constant 48 : index
      %16 = vector.load %arg2[%c0_5, %c0_6, %c48] : memref<1x8x96xf32, #tpu.memory_space<vmem>>, vector<1x8x8xf32>
      %17 = vector.shape_cast %16 : vector<1x8x8xf32> to vector<8x8xf32>
      %c0_7 = arith.constant 0 : index
      %c0_8 = arith.constant 0 : index
      %c80 = arith.constant 80 : index
      %18 = vector.load %arg2[%c0_7, %c0_8, %c80] : memref<1x8x96xf32, #tpu.memory_space<vmem>>, vector<1x8x8xf32>
      %19 = vector.shape_cast %18 : vector<1x8x8xf32> to vector<8x8xf32>
      %cst_9 = arith.constant dense<0.000000e+00> : vector<8x8xf32>
      %20 = tpu.matmul %15, %17, %cst_9 {dimension_numbers = #tpu.dot_dimension_numbers<[1], [1], [0], [0], [0, 0, 1, 0], [], []>} : vector<8x8xf32>, vector<8x8xf32>, vector<8x8xf32> -> vector<8x8xf32>
      %cst_10 = arith.constant dense<0xFF800000> : vector<8xf32>
      %21 = vector.multi_reduction <maximumf>, %20, %cst_10 [1] : vector<8x8xf32> to vector<8xf32>
      %22 = vector.shape_cast %21 : vector<8xf32> to vector<8x1xf32>
      %23 = vector.broadcast %22 : vector<8x1xf32> to vector<8x8xf32>
      %24 = arith.subf %20, %23 : vector<8x8xf32>
      %25 = math.exp %24 : vector<8x8xf32>
      %cst_11 = arith.constant dense<0.000000e+00> : vector<8xf32>
      %26 = vector.multi_reduction <add>, %25, %cst_11 [1] : vector<8x8xf32> to vector<8xf32>
      %27 = vector.shape_cast %26 : vector<8xf32> to vector<8x1xf32>
      %cst_12 = arith.constant 1.000000e+00 : f32
      %28 = vector.broadcast %cst_12 : f32 to vector<8x1xf32>
      %29 = arith.divf %28, %27 : vector<8x1xf32>
      %30 = vector.broadcast %29 : vector<8x1xf32> to vector<8x8xf32>
      %31 = arith.mulf %25, %30 : vector<8x8xf32>
      %cst_13 = arith.constant dense<0.000000e+00> : vector<8x8xf32>
      %32 = tpu.matmul %31, %19, %cst_13 {dimension_numbers = #tpu.dot_dimension_numbers<[1], [0], [0], [1], [0, 0, 1, 1], [], []>} : vector<8x8xf32>, vector<8x8xf32>, vector<8x8xf32> -> vector<8x8xf32>
      %c0_14 = arith.constant 0 : index
      %c0_15 = arith.constant 0 : index
      %c16_16 = arith.constant 16 : index
      %33 = vector.load %arg3[%c0_14, %c0_15, %c16_16] : memref<1x8x32xf32, #tpu.memory_space<vmem>>, vector<1x8x8xf32>
      %34 = vector.shape_cast %33 : vector<1x8x8xf32> to vector<8x8xf32>
      %35 = vector.shape_cast %32 : vector<8x8xf32> to vector<1x8x8xf32>
      tpu.vector_store %arg3[%c0_14, %c0_15, %c16_16], %35 {strides = array<i32>} : memref<1x8x32xf32, #tpu.memory_space<vmem>>, vector<1x8x8xf32>,
      %c0_17 = arith.constant 0 : index
      %c0_18 = arith.constant 0 : index
      %c0_19 = arith.constant 0 : index
      %c0_20 = arith.constant 0 : index
      %36 = vector.load %arg4[%c0_17, %c0_18, %c0_19, %c0_20] : memref<1x1x8x8xf32, #tpu.memory_space<vmem>>, vector<1x1x8x8xf32>
      %37 = vector.shape_cast %36 : vector<1x1x8x8xf32> to vector<8x8xf32>
      %38 = vector.shape_cast %31 : vector<8x8xf32> to vector<1x1x8x8xf32>
      tpu.vector_store %arg4[%c0_17, %c0_18, %c0_19, %c0_20], %38 {strides = array<i32>} : memref<1x1x8x8xf32, #tpu.memory_space<vmem>>, vector<1x1x8x8xf32>,
    } else {
    }
    %c3_i32 = arith.constant 3 : i32
    %9 = arith.cmpi eq, %arg1, %c3_i32 : i32
    %10 = arith.extui %9 : i1 to i32
    %c0_i32_3 = arith.constant 0 : i32
    %11 = arith.cmpi ne, %10, %c0_i32_3 : i32
    scf.if %11 {
      %c0 = arith.constant 0 : index
      %c0_4 = arith.constant 0 : index
      %c24 = arith.constant 24 : index
      %12 = vector.load %arg2[%c0, %c0_4, %c24] : memref<1x8x96xf32, #tpu.memory_space<vmem>>, vector<1x8x8xf32>
      %13 = vector.shape_cast %12 : vector<1x8x8xf32> to vector<8x8xf32>
      %cst = arith.constant 0.353553385 : f32
      %14 = vector.broadcast %cst : f32 to vector<8x8xf32>
      %15 = arith.mulf %13, %14 : vector<8x8xf32>
      %c0_5 = arith.constant 0 : index
      %c0_6 = arith.constant 0 : index
      %c56 = arith.constant 56 : index
      %16 = vector.load %arg2[%c0_5, %c0_6, %c56] : memref<1x8x96xf32, #tpu.memory_space<vmem>>, vector<1x8x8xf32>
      %17 = vector.shape_cast %16 : vector<1x8x8xf32> to vector<8x8xf32>
      %c0_7 = arith.constant 0 : index
      %c0_8 = arith.constant 0 : index
      %c88 = arith.constant 88 : index
      %18 = vector.load %arg2[%c0_7, %c0_8, %c88] : memref<1x8x96xf32, #tpu.memory_space<vmem>>, vector<1x8x8xf32>
      %19 = vector.shape_cast %18 : vector<1x8x8xf32> to vector<8x8xf32>
      %cst_9 = arith.constant dense<0.000000e+00> : vector<8x8xf32>
      %20 = tpu.matmul %15, %17, %cst_9 {dimension_numbers = #tpu.dot_dimension_numbers<[1], [1], [0], [0], [0, 0, 1, 0], [], []>} : vector<8x8xf32>, vector<8x8xf32>, vector<8x8xf32> -> vector<8x8xf32>
      %cst_10 = arith.constant dense<0xFF800000> : vector<8xf32>
      %21 = vector.multi_reduction <maximumf>, %20, %cst_10 [1] : vector<8x8xf32> to vector<8xf32>
      %22 = vector.shape_cast %21 : vector<8xf32> to vector<8x1xf32>
      %23 = vector.broadcast %22 : vector<8x1xf32> to vector<8x8xf32>
      %24 = arith.subf %20, %23 : vector<8x8xf32>
      %25 = math.exp %24 : vector<8x8xf32>
      %cst_11 = arith.constant dense<0.000000e+00> : vector<8xf32>
      %26 = vector.multi_reduction <add>, %25, %cst_11 [1] : vector<8x8xf32> to vector<8xf32>
      %27 = vector.shape_cast %26 : vector<8xf32> to vector<8x1xf32>
      %cst_12 = arith.constant 1.000000e+00 : f32
      %28 = vector.broadcast %cst_12 : f32 to vector<8x1xf32>
      %29 = arith.divf %28, %27 : vector<8x1xf32>
      %30 = vector.broadcast %29 : vector<8x1xf32> to vector<8x8xf32>
      %31 = arith.mulf %25, %30 : vector<8x8xf32>
      %cst_13 = arith.constant dense<0.000000e+00> : vector<8x8xf32>
      %32 = tpu.matmul %31, %19, %cst_13 {dimension_numbers = #tpu.dot_dimension_numbers<[1], [0], [0], [1], [0, 0, 1, 1], [], []>} : vector<8x8xf32>, vector<8x8xf32>, vector<8x8xf32> -> vector<8x8xf32>
      %c0_14 = arith.constant 0 : index
      %c0_15 = arith.constant 0 : index
      %c24_16 = arith.constant 24 : index
      %33 = vector.load %arg3[%c0_14, %c0_15, %c24_16] : memref<1x8x32xf32, #tpu.memory_space<vmem>>, vector<1x8x8xf32>
      %34 = vector.shape_cast %33 : vector<1x8x8xf32> to vector<8x8xf32>
      %35 = vector.shape_cast %32 : vector<8x8xf32> to vector<1x8x8xf32>
      tpu.vector_store %arg3[%c0_14, %c0_15, %c24_16], %35 {strides = array<i32>} : memref<1x8x32xf32, #tpu.memory_space<vmem>>, vector<1x8x8xf32>,
      %c0_17 = arith.constant 0 : index
      %c0_18 = arith.constant 0 : index
      %c0_19 = arith.constant 0 : index
      %c0_20 = arith.constant 0 : index
      %36 = vector.load %arg4[%c0_17, %c0_18, %c0_19, %c0_20] : memref<1x1x8x8xf32, #tpu.memory_space<vmem>>, vector<1x1x8x8xf32>
      %37 = vector.shape_cast %36 : vector<1x1x8x8xf32> to vector<8x8xf32>
      %38 = vector.shape_cast %31 : vector<8x8xf32> to vector<1x1x8x8xf32>
      tpu.vector_store %arg4[%c0_17, %c0_18, %c0_19, %c0_20], %38 {strides = array<i32>} : memref<1x1x8x8xf32, #tpu.memory_space<vmem>>, vector<1x1x8x8xf32>,
    } else {
    }
    return
  }
  func.func @transform_0(%arg0: i32, %arg1: i32) -> (i32, i32, i32) {
    %c0_i32 = arith.constant 0 : i32
    %c0_i32_0 = arith.constant 0 : i32
    %c0_i32_1 = arith.constant 0 : i32
    return %arg0, %c0_i32, %c0_i32_0 : i32, i32, i32
  }
  func.func @transform_1(%arg0: i32, %arg1: i32) -> (i32, i32, i32) {
    %c0_i32 = arith.constant 0 : i32
    %c0_i32_0 = arith.constant 0 : i32
    %c0_i32_1 = arith.constant 0 : i32
    return %arg0, %c0_i32, %c0_i32_0 : i32, i32, i32
  }
  func.func @transform_2(%arg0: i32, %arg1: i32) -> (i32, i32, i32, i32) {
    %c0_i32 = arith.constant 0 : i32
    %c0_i32_0 = arith.constant 0 : i32
    %c0_i32_1 = arith.constant 0 : i32
    return %arg0, %arg1, %c0_i32, %c0_i32_0 : i32, i32, i32, i32
  }
}

module attributes {stable_mosaic.version = 11 : i64} {
  func.func @_linear_kernel(%arg0: i32, %arg1: i32, %arg2: i32, %arg3: memref<16x32xf32, #tpu.memory_space<vmem>>, %arg4: memref<32x32xf32, #tpu.memory_space<vmem>>, %arg5: memref<1x32xf32, #tpu.memory_space<vmem>>, %arg6: memref<16x32xf32, #tpu.memory_space<vmem>>, %arg7: memref<16x32xf32, #tpu.memory_space<vmem>>) attributes {dimension_semantics = [#tpu.dimension_semantics<parallel>, #tpu.dimension_semantics<parallel>, #tpu.dimension_semantics<arbitrary>], iteration_bounds = array<i64: 1, 1, 1>, scalar_prefetch = 0 : i64, scratch_operands = 1 : i64, tpu.core_type = #tpu.core_type<tc>, window_params = [{transform_indices = @transform_0, window_bounds = array<i64: 16, 32>}, {transform_indices = @transform_1, window_bounds = array<i64: 32, 32>}, {transform_indices = @transform_2, window_bounds = array<i64: 1, 32>}, {transform_indices = @transform_3, window_bounds = array<i64: 16, 32>}]} {
    %c0_i32 = arith.constant 0 : i32
    %0 = arith.cmpi eq, %arg2, %c0_i32 : i32
    %1 = arith.extui %0 : i1 to i32
    %c0_i32_0 = arith.constant 0 : i32
    %2 = arith.cmpi ne, %1, %c0_i32_0 : i32
    scf.if %2 {
      %cst_10 = arith.constant 0.000000e+00 : f32
      %12 = vector.broadcast %cst_10 : f32 to vector<16x32xf32>
      %c0_11 = arith.constant 0 : index
      %c0_12 = arith.constant 0 : index
      %13 = vector.load %arg7[%c0_11, %c0_12] : memref<16x32xf32, #tpu.memory_space<vmem>>, vector<16x32xf32>
      tpu.vector_store %arg7[%c0_11, %c0_12], %12 {strides = array<i32>} : memref<16x32xf32, #tpu.memory_space<vmem>>, vector<16x32xf32>,
    } else {
    }
    %c0 = arith.constant 0 : index
    %c0_1 = arith.constant 0 : index
    %3 = vector.load %arg7[%c0, %c0_1] : memref<16x32xf32, #tpu.memory_space<vmem>>, vector<16x32xf32>
    %c0_2 = arith.constant 0 : index
    %c0_3 = arith.constant 0 : index
    %4 = vector.load %arg3[%c0_2, %c0_3] : memref<16x32xf32, #tpu.memory_space<vmem>>, vector<16x32xf32>
    %c0_4 = arith.constant 0 : index
    %c0_5 = arith.constant 0 : index
    %5 = vector.load %arg4[%c0_4, %c0_5] : memref<32x32xf32, #tpu.memory_space<vmem>>, vector<32x32xf32>
    %cst = arith.constant dense<0.000000e+00> : vector<16x32xf32>
    %6 = tpu.matmul %4, %5, %cst {dimension_numbers = #tpu.dot_dimension_numbers<[1], [0], [0], [1], [0, 0, 1, 1], [], []>} : vector<16x32xf32>, vector<32x32xf32>, vector<16x32xf32> -> vector<16x32xf32>
    %7 = arith.addf %3, %6 : vector<16x32xf32>
    %c0_6 = arith.constant 0 : index
    %c0_7 = arith.constant 0 : index
    %8 = vector.load %arg7[%c0_6, %c0_7] : memref<16x32xf32, #tpu.memory_space<vmem>>, vector<16x32xf32>
    tpu.vector_store %arg7[%c0_6, %c0_7], %7 {strides = array<i32>} : memref<16x32xf32, #tpu.memory_space<vmem>>, vector<16x32xf32>,
    %c0_i32_8 = arith.constant 0 : i32
    %9 = arith.cmpi eq, %arg2, %c0_i32_8 : i32
    %10 = arith.extui %9 : i1 to i32
    %c0_i32_9 = arith.constant 0 : i32
    %11 = arith.cmpi ne, %10, %c0_i32_9 : i32
    scf.if %11 {
      %c0_10 = arith.constant 0 : index
      %c0_11 = arith.constant 0 : index
      %12 = vector.load %arg7[%c0_10, %c0_11] : memref<16x32xf32, #tpu.memory_space<vmem>>, vector<16x32xf32>
      %c0_12 = arith.constant 0 : index
      %c0_13 = arith.constant 0 : index
      %13 = vector.load %arg5[%c0_12, %c0_13] : memref<1x32xf32, #tpu.memory_space<vmem>>, vector<1x32xf32>
      %14 = vector.broadcast %13 : vector<1x32xf32> to vector<16x32xf32>
      %15 = arith.addf %12, %14 : vector<16x32xf32>
      %c0_14 = arith.constant 0 : index
      %c0_15 = arith.constant 0 : index
      %16 = vector.load %arg6[%c0_14, %c0_15] : memref<16x32xf32, #tpu.memory_space<vmem>>, vector<16x32xf32>
      tpu.vector_store %arg6[%c0_14, %c0_15], %15 {strides = array<i32>} : memref<16x32xf32, #tpu.memory_space<vmem>>, vector<16x32xf32>,
    } else {
    }
    return
  }
  func.func @transform_0(%arg0: i32, %arg1: i32, %arg2: i32) -> (i32, i32) {
    %c0_i32 = arith.constant 0 : i32
    return %arg0, %arg2 : i32, i32
  }
  func.func @transform_1(%arg0: i32, %arg1: i32, %arg2: i32) -> (i32, i32) {
    %c0_i32 = arith.constant 0 : i32
    return %arg2, %arg1 : i32, i32
  }
  func.func @transform_2(%arg0: i32, %arg1: i32, %arg2: i32) -> (i32, i32) {
    %c0_i32 = arith.constant 0 : i32
    %c0_i32_0 = arith.constant 0 : i32
    return %c0_i32, %arg1 : i32, i32
  }
  func.func @transform_3(%arg0: i32, %arg1: i32, %arg2: i32) -> (i32, i32) {
    %c0_i32 = arith.constant 0 : i32
    return %arg0, %arg1 : i32, i32
  }
}

module attributes {stable_mosaic.version = 11 : i64} {
  func.func @_linear_kernel(%arg0: i32, %arg1: i32, %arg2: i32, %arg3: memref<16x32xf32, #tpu.memory_space<vmem>>, %arg4: memref<32x96xf32, #tpu.memory_space<vmem>>, %arg5: memref<1x96xf32, #tpu.memory_space<vmem>>, %arg6: memref<16x96xf32, #tpu.memory_space<vmem>>, %arg7: memref<16x96xf32, #tpu.memory_space<vmem>>) attributes {dimension_semantics = [#tpu.dimension_semantics<parallel>, #tpu.dimension_semantics<parallel>, #tpu.dimension_semantics<arbitrary>], iteration_bounds = array<i64: 1, 1, 1>, scalar_prefetch = 0 : i64, scratch_operands = 1 : i64, tpu.core_type = #tpu.core_type<tc>, window_params = [{transform_indices = @transform_0, window_bounds = array<i64: 16, 32>}, {transform_indices = @transform_1, window_bounds = array<i64: 32, 96>}, {transform_indices = @transform_2, window_bounds = array<i64: 1, 96>}, {transform_indices = @transform_3, window_bounds = array<i64: 16, 96>}]} {
    %c0_i32 = arith.constant 0 : i32
    %0 = arith.cmpi eq, %arg2, %c0_i32 : i32
    %1 = arith.extui %0 : i1 to i32
    %c0_i32_0 = arith.constant 0 : i32
    %2 = arith.cmpi ne, %1, %c0_i32_0 : i32
    scf.if %2 {
      %cst_10 = arith.constant 0.000000e+00 : f32
      %12 = vector.broadcast %cst_10 : f32 to vector<16x96xf32>
      %c0_11 = arith.constant 0 : index
      %c0_12 = arith.constant 0 : index
      %13 = vector.load %arg7[%c0_11, %c0_12] : memref<16x96xf32, #tpu.memory_space<vmem>>, vector<16x96xf32>
      tpu.vector_store %arg7[%c0_11, %c0_12], %12 {strides = array<i32>} : memref<16x96xf32, #tpu.memory_space<vmem>>, vector<16x96xf32>,
    } else {
    }
    %c0 = arith.constant 0 : index
    %c0_1 = arith.constant 0 : index
    %3 = vector.load %arg7[%c0, %c0_1] : memref<16x96xf32, #tpu.memory_space<vmem>>, vector<16x96xf32>
    %c0_2 = arith.constant 0 : index
    %c0_3 = arith.constant 0 : index
    %4 = vector.load %arg3[%c0_2, %c0_3] : memref<16x32xf32, #tpu.memory_space<vmem>>, vector<16x32xf32>
    %c0_4 = arith.constant 0 : index
    %c0_5 = arith.constant 0 : index
    %5 = vector.load %arg4[%c0_4, %c0_5] : memref<32x96xf32, #tpu.memory_space<vmem>>, vector<32x96xf32>
    %cst = arith.constant dense<0.000000e+00> : vector<16x96xf32>
    %6 = tpu.matmul %4, %5, %cst {dimension_numbers = #tpu.dot_dimension_numbers<[1], [0], [0], [1], [0, 0, 1, 1], [], []>} : vector<16x32xf32>, vector<32x96xf32>, vector<16x96xf32> -> vector<16x96xf32>
    %7 = arith.addf %3, %6 : vector<16x96xf32>
    %c0_6 = arith.constant 0 : index
    %c0_7 = arith.constant 0 : index
    %8 = vector.load %arg7[%c0_6, %c0_7] : memref<16x96xf32, #tpu.memory_space<vmem>>, vector<16x96xf32>
    tpu.vector_store %arg7[%c0_6, %c0_7], %7 {strides = array<i32>} : memref<16x96xf32, #tpu.memory_space<vmem>>, vector<16x96xf32>,
    %c0_i32_8 = arith.constant 0 : i32
    %9 = arith.cmpi eq, %arg2, %c0_i32_8 : i32
    %10 = arith.extui %9 : i1 to i32
    %c0_i32_9 = arith.constant 0 : i32
    %11 = arith.cmpi ne, %10, %c0_i32_9 : i32
    scf.if %11 {
      %c0_10 = arith.constant 0 : index
      %c0_11 = arith.constant 0 : index
      %12 = vector.load %arg7[%c0_10, %c0_11] : memref<16x96xf32, #tpu.memory_space<vmem>>, vector<16x96xf32>
      %c0_12 = arith.constant 0 : index
      %c0_13 = arith.constant 0 : index
      %13 = vector.load %arg5[%c0_12, %c0_13] : memref<1x96xf32, #tpu.memory_space<vmem>>, vector<1x96xf32>
      %14 = vector.broadcast %13 : vector<1x96xf32> to vector<16x96xf32>
      %15 = arith.addf %12, %14 : vector<16x96xf32>
      %c0_14 = arith.constant 0 : index
      %c0_15 = arith.constant 0 : index
      %16 = vector.load %arg6[%c0_14, %c0_15] : memref<16x96xf32, #tpu.memory_space<vmem>>, vector<16x96xf32>
      tpu.vector_store %arg6[%c0_14, %c0_15], %15 {strides = array<i32>} : memref<16x96xf32, #tpu.memory_space<vmem>>, vector<16x96xf32>,
    } else {
    }
    return
  }
  func.func @transform_0(%arg0: i32, %arg1: i32, %arg2: i32) -> (i32, i32) {
    %c0_i32 = arith.constant 0 : i32
    return %arg0, %arg2 : i32, i32
  }
  func.func @transform_1(%arg0: i32, %arg1: i32, %arg2: i32) -> (i32, i32) {
    %c0_i32 = arith.constant 0 : i32
    return %arg2, %arg1 : i32, i32
  }
  func.func @transform_2(%arg0: i32, %arg1: i32, %arg2: i32) -> (i32, i32) {
    %c0_i32 = arith.constant 0 : i32
    %c0_i32_0 = arith.constant 0 : i32
    return %c0_i32, %arg1 : i32, i32
  }
  func.func @transform_3(%arg0: i32, %arg1: i32, %arg2: i32) -> (i32, i32) {
    %c0_i32 = arith.constant 0 : i32
    return %arg0, %arg1 : i32, i32
  }
}

</mosaic_0001>

<bundles_post_ra>
// kernel: siglip_attention.3
= control target key start
LH: loop header
LB: loop body
LE: loop exit
PB: predicated region body
PF: predicated region fallthrough
CT: control target
= control target key end

     0   :  { %8 = vsyncpa [#allocation4], 0  ;;  %s225_s0 = inlined_call_operand.hbm [shape: f32[16,32], index: 0, kind: input, shape index: {}]   ;;  %s226_s1 = inlined_call_operand.hbm [shape: f32[32,96], index: 1, kind: input, shape index: {}]   ;;  %s227_s2 = inlined_call_operand.vmem [shape: f32[1,96], index: 2, kind: input, shape index: {}]   ;;  %s228_s3 = inlined_call_operand.vmem [shape: f32[16,96], index: 3, kind: output, shape index: {}]  }
   0x1   :  { %s14_s14 = sshll.u32 %s225_s0, 4  ;;  %s15_s14 = int_to_ptr.hbm [resolvable:$true] %s14_s14 }
   0x2   :  { %9 = vsyncpa [#allocation6], 0  ;;  %s179_s15 = smov [#allocation3]   ;;  %s27_s19 = sshll.u32 %s226_s1, 4  ;;  %s28_s19 = int_to_ptr.hbm [resolvable:$true] %s27_s19 }
   0x3   :  { %s16_s16 = sshll.u32 %s179_s15, 4  ;;  %s180_s20 = smov 128   ;;  %s17_s16 = int_to_ptr.vmem [resolvable:$true] %s16_s16 }
   0x4   :  { %s181_s21 = smov 8   ;;  %s182_s22 = smov [#allocation5]  }
   0x5   :  { %22 = dma.hbm_to_vmem [thread:$0]  %s15_s14, 256, %s17_s16, [#allocation4], %s180_s20, %s180_s20, %s181_s21  }
   0x6   :  { %s29_s23 = sshll.u32 %s182_s22, 4  ;;  %s30_s23 = int_to_ptr.vmem [resolvable:$true] %s29_s23 }
   0x7   :  { %35 = dma.hbm_to_vmem [thread:$0]  %s28_s19, 512, %s30_s23, [#allocation6], %s180_s20, %s180_s20, %s181_s21  }
   0x8   :  { %175 = dma.done.wait [#allocation4], 256  }
   0x9   :  { %176 = vsyncadd [#allocation4], 4294967040 }
   0xa   :  { %177 = dma.done.wait [#allocation6], 512  }
   0xb   :  { %178 = vsyncadd [#allocation6], 4294966784  ;;  %vm50_vm0 = vcmask 785408   ;;  %v183_v0 = vmov 0.0   ;;  %v60_v1 = vld [vmem:[#allocation5 + $0x18] sm:$0xff]  ;;  %v59_v2 = vld [vmem:[#allocation5 + $0x10] sm:$0xff] }
   0xc   :  { %51 = vst.msk [vmem:[#allocation2] sm:$0xff] %vm50_vm0, %v183_v0  ;;  %80 = vmatpush.msra.mxu0 %v60_v1  ;;  %117 = vmatpush.msra.mxu1 %v60_v1  ;;  %v58_v3 = vld [vmem:[#allocation5 + $0x8] sm:$0xff]  ;;  %v57_v4 = vld [vmem:[#allocation5] sm:$0xff]  ;;  %v55_v5 = vld [vmem:[#allocation3] sm:$0xff]  ;;  %vm61_vm1 = vcmask 261120  }
   0xd   :  { %52 = vst.msk [vmem:[#allocation2 + $0x8] sm:$0xff] %vm50_vm0, %v183_v0  ;;  %v56_v6 = vld [vmem:[#allocation3 + $0x8] sm:$0xff]  ;;  %v126_v13 = vld [vmem:[%s227_s2] ss:$0 sm:$0xff] }
   0xe   :  { %81 = vmatpush.msra.mxu0 %v59_v2  ;;  %118 = vmatpush.msra.mxu1 %v59_v2 }
  0x10   :  { %82 = vmatpush.msra.mxu0 %v58_v3  ;;  %119 = vmatpush.msra.mxu1 %v58_v3 }
  0x12   :  { %83 = vmatpush.msra.mxu0 %v57_v4  ;;  %120 = vmatpush.msra.mxu1 %v57_v4 }
  0x13   :  { %115 = vmatmul.msk.f32.vlgmr.msra.gmra.mxu0 %vm61_vm1, %v55_v5  ;;  %116 = vmatmul.msk.f32.vlgmr.msra.gmra.mxu1 %vm61_vm1, %v56_v6  ;;  %v53_v7 = vld [vmem:[#allocation2] sm:$0xff] }
  0x14   :  { %v54_v8 = vld [vmem:[#allocation2 + $0x8] sm:$0xff] }
  0x90   :  { %v85_v9 = vpop.f32.mrf.mxu0  ;;  %v88_v10 = vpop.f32.mrf.mxu1 }
  0x91   :  { %v91_v11 = vadd.f32 %v85_v9, %v53_v7  ;;  %v92_v12 = vadd.f32 %v88_v10, %v54_v8 }
  0x93   :  { %94 = vst.msk [vmem:[#allocation2] sm:$0xff] %vm50_vm0, %v91_v11 }
  0x94   :  { %95 = vst.msk [vmem:[#allocation2 + $0x8] sm:$0xff] %vm50_vm0, %v92_v12 }
  0x9a   :  { %v99_v14 = vld [vmem:[#allocation2] sm:$0xff] }
  0x9b   :  { %v105_v15 = vadd.f32 %v126_v13, %v99_v14  ;;  %v100_v16 = vld [vmem:[#allocation2 + $0x8] sm:$0xff] }
  0x9c   :  { %v106_v17 = vadd.f32 %v126_v13, %v100_v16 }
  0x9d   :  { %107 = vst.msk [vmem:[%s228_s3] sm:$0xff] %vm50_vm0, %v105_v15 }
  0x9e   :  { %108 = vst.msk [vmem:[%s228_s3 + $0x8] sm:$0xff] %vm50_vm0, %v106_v17 }
  0x9f   :  { %113 = vsyncpa [#allocation4], 1 }
  0xa0   :  { %114 = vsyncpa [#allocation6], 1 }

// kernel: siglip_attention.5
= control target key start
LH: loop header
LB: loop body
LE: loop exit
PB: predicated region body
PF: predicated region fallthrough
CT: control target
= control target key end

     0   :  { %8 = vsyncpa [#allocation4], 0  ;;  %s230_s0 = inlined_call_operand.vmem [shape: f32[16,32], index: 0, kind: input, shape index: {}]   ;;  %s231_s1 = inlined_call_operand.hbm [shape: f32[32,32], index: 1, kind: input, shape index: {}]   ;;  %s232_s2 = inlined_call_operand.vmem [shape: f32[1,32], index: 2, kind: input, shape index: {}]   ;;  %s233_s3 = inlined_call_operand.hbm [shape: f32[16,32], index: 3, kind: output, shape index: {}]  }
   0x1   :  { %9 = vsyncpa [#allocation5], 0  ;;  %s16_s14 = sshll.u32 %s231_s1, 4  ;;  %s176_s15 = smov [#allocation3]   ;;  %s17_s14 = int_to_ptr.hbm [resolvable:$true] %s16_s14 }
   0x2   :  { %s18_s16 = sshll.u32 %s176_s15, 4  ;;  %s177_s17 = smov 128   ;;  %s19_s16 = int_to_ptr.vmem [resolvable:$true] %s18_s16 }
   0x3   :  { %s178_s18 = smov 8  }
   0x4   :  { %24 = dma.hbm_to_vmem [thread:$0]  %s17_s14, 512, %s19_s16, [#allocation4], %s177_s17, %s177_s17, %s178_s18  }
   0x5   :  { %172 = dma.done.wait [#allocation4], 512  }
   0x6   :  { %173 = vsyncadd [#allocation4], 4294966784  ;;  %vm35_vm0 = vcmask 261120   ;;  %v179_v0 = vmov 0.0   ;;  %v45_v1 = vld [vmem:[#allocation3 + $0x18] sm:$0xff]  ;;  %v44_v2 = vld [vmem:[#allocation3 + $0x10] sm:$0xff] }
   0x7   :  { %36 = vst.msk [vmem:[#allocation2] sm:$0xff] %vm35_vm0, %v179_v0  ;;  %65 = vmatpush.msra.mxu0 %v45_v1  ;;  %114 = vmatpush.msra.mxu1 %v45_v1  ;;  %v43_v3 = vld [vmem:[#allocation3 + $0x8] sm:$0xff]  ;;  %v42_v4 = vld [vmem:[#allocation3] sm:$0xff]  ;;  %v40_v5 = vld [vmem:[%s230_s0] sm:$0xff]  ;;  %s99_s27 = sshll.u32 %s233_s3, 4  ;;  %s100_s27 = int_to_ptr.hbm [resolvable:$true] %s99_s27 }
   0x8   :  { %37 = vst.msk [vmem:[#allocation2 + $0x8] sm:$0xff] %vm35_vm0, %v179_v0  ;;  %v41_v6 = vld [vmem:[%s230_s0 + $0x8] sm:$0xff]  ;;  %v123_v13 = vld [vmem:[%s232_s2] ss:$0 sm:$0xff]  ;;  %s180_s0 = smov [#allocation6]  }
   0x9   :  { %66 = vmatpush.msra.mxu0 %v44_v2  ;;  %115 = vmatpush.msra.mxu1 %v44_v2  ;;  %s97_s24 = sshll.u32 %s180_s0, 4  ;;  %s98_s24 = int_to_ptr.vmem [resolvable:$true] %s97_s24 }
   0xb   :  { %67 = vmatpush.msra.mxu0 %v43_v3  ;;  %116 = vmatpush.msra.mxu1 %v43_v3 }
   0xd   :  { %68 = vmatpush.msra.mxu0 %v42_v4  ;;  %117 = vmatpush.msra.mxu1 %v42_v4 }
   0xe   :  { %112 = vmatmul.msk.f32.vlgmr.msra.gmra.mxu0 %vm35_vm0, %v40_v5  ;;  %113 = vmatmul.msk.f32.vlgmr.msra.gmra.mxu1 %vm35_vm0, %v41_v6  ;;  %v38_v7 = vld [vmem:[#allocation2] sm:$0xff] }
   0xf   :  { %v39_v8 = vld [vmem:[#allocation2 + $0x8] sm:$0xff] }
  0x8b   :  { %v70_v9 = vpop.f32.mrf.mxu0  ;;  %v73_v10 = vpop.f32.mrf.mxu1 }
  0x8c   :  { %v76_v11 = vadd.f32 %v70_v9, %v38_v7  ;;  %v77_v12 = vadd.f32 %v73_v10, %v39_v8 }
  0x8e   :  { %78 = vst.msk [vmem:[#allocation2] sm:$0xff] %vm35_vm0, %v76_v11 }
  0x8f   :  { %79 = vst.msk [vmem:[#allocation2 + $0x8] sm:$0xff] %vm35_vm0, %v77_v12 }
  0x95   :  { %v83_v14 = vld [vmem:[#allocation2] sm:$0xff] }
  0x96   :  { %v84_v15 = vld [vmem:[#allocation2 + $0x8] sm:$0xff]  ;;  %v89_v16 = vadd.f32 %v123_v13, %v83_v14 }
  0x97   :  { %v90_v17 = vadd.f32 %v123_v13, %v84_v15 }
  0x98   :  { %91 = vst.msk [vmem:[#allocation6] sm:$0xff] %vm35_vm0, %v89_v16 }
  0x99   :  { %92 = vst.msk [vmem:[#allocation6 + $0x8] sm:$0xff] %vm35_vm0, %v90_v17 }
  0x9a   :  { %105 = dma.vmem_to_hbm [thread:$0]  %s98_s24, 256, %s100_s27, [#allocation5], %s177_s17, %s177_s17, %s178_s18  }
  0x9b   :  { %174 = dma.done.wait [#allocation5], 256  }
  0x9c   :  { %175 = vsyncadd [#allocation5], 4294967040 }
  0x9d   :  { %110 = vsyncpa [#allocation4], 1 }
  0x9e   :  { %111 = vsyncpa [#allocation5], 1 }

// kernel: siglip_attention.4
= control target key start
LH: loop header
LB: loop body
LE: loop exit
PB: predicated region body
PF: predicated region fallthrough
CT: control target
= control target key end

     0   :  { %8 = vsyncpa [#allocation3], 0  ;;  %s1088_s0 = inlined_call_operand.vmem [shape: f32[2,8,96], index: 0, kind: input, shape index: {}]   ;;  %s1089_s1 = inlined_call_operand.vmem [shape: f32[2,8,32], index: 1, kind: output, shape index: {0}]   ;;  %s1090_s2 = inlined_call_operand.hbm [shape: f32[2,4,8,8], index: 2, kind: output, shape index: {1}]  }
   0x1   :  { %10 = vsyncpa [#allocation3 + $0x1], 0  ;;  %s913_s9 = smov 0   ;;  %s915_s10 = smov 0  }
   0x2   :  { %s917_s11 = smov 0   ;;  %s919_s12 = smov 0  }
   0x3   :  { %s921_s13 = smov 0   ;;  %s923_s14 = smov 0  }
   0x4   :  { %s925_s15 = smov 0   ;;  %s927_s16 = smov 0  }
   0x5 LB: > { %s658_s17 = sadd.s32 4294967295, %s882_s16   ;;  %s659_s18 = sadd.s32 4294967294, %s882_s16   ;;  %s882_s16 = sphi %s927_s16, %s16_s16   ;;  %s878_s15 = sphi %s925_s15, %s1099_s15   ;;  %s874_s14 = sphi %s923_s14, %s1098_s14   ;;  %s870_s13 = sphi %s921_s13, %s1097_s13   ;;  %s866_s12 = sphi %s919_s12, %s1096_s12   ;;  %s862_s11 = sphi %s917_s11, %s1095_s11   ;;  %s858_s10 = sphi %s915_s10, %s1094_s10   ;;  %s854_s9 = sphi %s913_s9, %s1093_s9  }
   0x6   : > { %s25_s19 = sadd.s32 1, %s874_s14  ;;  %s28_s20 = sadd.s32 1, %s878_s15 }
   0x7   : > { %p26_p0 = scmp.ge.s32.totalorder %s25_s19, 4  ;;  %p99_p1 = scmp.ne.s32.totalorder %s862_s11, %s858_s10 }
   0x8   : > { %p100_p2 = scmp.eq.s32.totalorder %s658_s17, 7  ;;  %p105_p5 = scmp.ne.s32.totalorder %s858_s10, %s854_s9 }
   0x9   : > { %s1101_s19 = smov (%p26_p0, %s25_s19), 0  ;;  %s1103_s20 = smov (!%p26_p0, %s28_s20), %s878_s15 }
   0xa   : > { %s85_s21 = ssub.s32 %s874_s14, %s1101_s19  ;;  %p964_p3 = por %p100_p2, %p99_p1 }
   0xb   : > { %p30_p4 = scmp.ge.s32.totalorder %s1103_s20, 2  ;;  %p106_p6 = scmp.eq.s32.totalorder %s659_s18, 7 }
   0xc   : > { %p662_p7 = scmp.ge.s32.totalorder %s882_s16, 1  ;;  %p131_p9 = scmp.lt.s32.totalorder %s882_s16, 9 }
   0xd   : > { %s1105_s20 = smov (%p30_p4, %s1103_s20), 0  ;;  %p973_p8 = por %p106_p6, %p105_p5 }
   0xe   : > { %s84_s24 = ssub.s32 %s878_s15, %s1105_s20  ;;  %s89_s25 = sadd.s32 1, %s862_s11 }
   0xf   : > { %s86_s26 = sor.u32 %s85_s21, %s84_s24  ;;  %p132_p10 = pnand %p662_p7, %p131_p9 }
  0x10   : > { %p87_p11 = scmp.eq.s32.totalorder %s86_s26, 0  ;;  %s153_s28 = sand.u32 (!%p132_p10), 1, %s858_s10  }
  0x11   : > { %135 = sbr.rel (%p132_p10) target bundleno = 2904 (0xb58), region = 24  ;;  %p156_p12 = scmp.lt.s32.totalorder (!%p132_p10), %s870_s13, 1 }
  0x12   : > { %s982_s27 = scalar_select %p87_p11, %s862_s11, %s89_s25  }
  0x13   : > { %s663_s29 = sshll.u32 (!%p132_p10), %s153_s28, 3  ;;  %p666_p13 = scmp.ne.s32.totalorder (!%p132_p10), %s866_s12, 0 }
  0x14   : > { %s999_s18 = scalar_lea.vmem (!%p132_p10), [#allocation2], %s663_s29 }
  0x16   : > { %s157_s30 = scalar_select %p156_p12, %s870_s13, 1 }
  0x17   : > { %167 = sbr.rel (%p666_p13) target bundleno = 670 (0x29e), region = 28  ;;  %s884_s21 = smov (!%p666_p13), 96  }
  0x18   : > { %s664_s3 = sshll.u32 %s157_s30, 3  ;;  %s885_s24 = smov (!%p666_p13), 64  }
  0x19   : > { %s992_s6 = scalar_lea.vmem %s1088_s0, %s664_s3  ;;  %s997_s17 = scalar_lea.vmem %s1089_s1, %s664_s3 }
  0x1c   : > { %v168_v0 = vld [vmem:[%s992_s6] sm:$0xff]  ;;  %vm173_vm0 = vcmask 64512  }
  0x1d   : > { %171 = vrot.lane.b32.xlu0 %v168_v0, %s884_s21  ;;  %v169_v2 = vmul.f32 0.35355338, %v168_v0 }
  0x8f   : > { %v172_v1 = vpop.permute.xlu0 %171 }
  0x90   : > { %667 = vmatpush.xpose.msk.msra.mxu0 %vm173_vm0, %v172_v1 }
  0x93   : > { %668 = vmatmul.msk.f32.vlgmr.msra.gmra.mxu0 %vm173_vm0, %v169_v2 }
 0x110   : > { %v196_v3 = vpop.f32.mrf.mxu0 }
 0x111   : > { %v199_v4 = vsel %vm173_vm0, %v196_v3, -inf }
 0x112   : > { %200 = vmax.xlane.f32.xlu0 %v199_v4 }
 0x185   : > { %v201_v5 = vpop.xlane.xlu0 %200 }
 0x186   : > { %v202_v6 = vsub.f32 %v196_v3, %v201_v5 }
 0x188   : > { %v203_v7 = vmul.f32 1.442695, %v202_v6 }
 0x18a   : > { %772 = vpow2.f32 %v203_v7 }
 0x190   : > { %v773_v8 = vpop.eup %772 }
 0x191   : > { %v205_v9 = vsel %vm173_vm0, %v773_v8, 0.0 }
 0x192   : > { %206 = vadd.xlane.f32.xlu1 %v205_v9 }
 0x1ab   : > { %224 = vrot.lane.b32.xlu1 %v168_v0, %s885_s24 }
 0x205   : > { %v207_v10 = vpop.xlane.xlu1 %206 }
 0x206   : > { %774 = vrcp.f32 %v207_v10  ;;  %v219_v14 = vand.u32 2147483648, %v207_v10  ;;  %v217_v16 = vand.u32 2147483647, %v207_v10  ;;  %vm213_vm2 = vweird.f32 %v207_v10 }
 0x208   : > { %v220_v18 = vor.u32 1.1754944e-38, %v219_v14  ;;  %vm218_vm4 = vcmp.eq.f32.partialorder %v217_v16, 8.507059e+37 }
 0x20c   : > { %v775_v11 = vpop.eup %774 }
 0x20d   : > { %v209_v12 = vmul.f32 %v775_v11, %v207_v10  ;;  %vm214_vm1 = vweird.f32 %v775_v11 }
 0x20e   : > { %vm215_vm3 = vmor %vm213_vm2, %vm214_vm1 }
 0x20f   : > { %v210_v13 = vsub.f32 1.0, %v209_v12 }
 0x211   : > { %v211_v15 = vmul.f32 %v775_v11, %v210_v13 }
 0x213   : > { %v212_v17 = vadd.f32 %v775_v11, %v211_v15 }
 0x215   : > { %v216_v19 = vsel %vm215_vm3, %v775_v11, %v212_v17 }
 0x216   : > { %v221_v20 = vsel %vm218_vm4, %v220_v18, %v216_v19 }
 0x217   : > { %v223_v21 = vmul.f32 %v773_v8, %v221_v20 }
 0x219   : > { %251 = vst.msk [vmem:[%s999_s18] sm:$0xff] %vm173_vm0, %v223_v21 }
 0x21d   : > { %v225_v22 = vpop.permute.xlu1 %224 }
 0x21e   : > { %245 = vmatpush.msra.mxu1 %v225_v22 }
 0x21f   : > { %669 = vmatmul.msk.f32.vlgmr.msra.gmra.mxu1 %vm173_vm0, %v223_v21 }
 0x29c   : > { %v247_v23 = vpop.f32.mrf.mxu1 }
 0x29d   : > { %250 = vst.msk [vmem:[%s997_s17] sm:$0xff] %vm173_vm0, %v247_v23 }
 0x29e PF: > { %p670_p0 = scmp.ne.s32.totalorder %s866_s12, 1 }
 0x29f   : > { %s886_s25 = smov (!%p670_p0), 88   ;;  %s887_s26 = smov (!%p670_p0), 120  }
 0x2a0   : > { %255 = sbr.rel (%p670_p0) target bundleno = 1409 (0x581), region = 32  ;;  %s888_s29 = smov (!%p670_p0), 56  }
 0x2a1   : > { %s889_s30 = smov (!%p670_p0), 8  }
 0x2a5   : > { %v256_v24 = vld [vmem:[%s992_s6] sm:$0xff]  ;;  %vm264_vm5 = vcmask 64512   ;;  %vm344_vm10 = vcmask 130112  }
 0x2a6   : > { %262 = vrot.lane.b32.xlu0 %v256_v24, %s886_s25  ;;  %v257_v25 = vmul.f32 0.35355338, %v256_v24  ;;  %314 = vrot.lane.b32.xlu2 %v256_v24, %s888_s29 }
 0x2ae   : > { %259 = vrot.lane.b32.xlu0 %v257_v25, %s887_s26 }
 0x300   : > { %v315_v35 = vpop.permute.xlu2 %314 }
 0x301   : > { %335 = vmatpush.msra.mxu1 %v315_v35 }
 0x318   : > { %v263_v26 = vpop.permute.xlu0 %262 }
 0x319   : > { %671 = vmatpush.xpose.msk.msra.mxu0 %vm264_vm5, %v263_v26 }
 0x320   : > { %v260_v27 = vpop.permute.xlu0 %259 }
 0x321   : > { %672 = vmatmul.msk.f32.vlgmr.msra.gmra.mxu0 %vm264_vm5, %v260_v27 }
 0x39e   : > { %v286_v28 = vpop.f32.mrf.mxu0 }
 0x39f   : > { %v289_v29 = vsel %vm264_vm5, %v286_v28, -inf }
 0x3a0   : > { %290 = vmax.xlane.f32.xlu1 %v289_v29 }
 0x413   : > { %v291_v30 = vpop.xlane.xlu1 %290 }
 0x414   : > { %v292_v31 = vsub.f32 %v286_v28, %v291_v30 }
 0x416   : > { %v293_v32 = vmul.f32 1.442695, %v292_v31 }
 0x418   : > { %776 = vpow2.f32 %v293_v32 }
 0x41e   : > { %v777_v33 = vpop.eup %776 }
 0x41f   : > { %v295_v34 = vsel %vm264_vm5, %v777_v33, 0.0 }
 0x420   : > { %296 = vadd.xlane.f32.xlu1 %v295_v34 }
 0x493   : > { %v297_v36 = vpop.xlane.xlu1 %296 }
 0x494   : > { %778 = vrcp.f32 %v297_v36  ;;  %v309_v40 = vand.u32 2147483648, %v297_v36  ;;  %v307_v42 = vand.u32 2147483647, %v297_v36  ;;  %vm303_vm7 = vweird.f32 %v297_v36 }
 0x496   : > { %v310_v44 = vor.u32 1.1754944e-38, %v309_v40  ;;  %vm308_vm9 = vcmp.eq.f32.partialorder %v307_v42, 8.507059e+37 }
 0x49a   : > { %v779_v37 = vpop.eup %778 }
 0x49b   : > { %v299_v38 = vmul.f32 %v779_v37, %v297_v36  ;;  %vm304_vm6 = vweird.f32 %v779_v37 }
 0x49c   : > { %vm305_vm8 = vmor %vm303_vm7, %vm304_vm6 }
 0x49d   : > { %v300_v39 = vsub.f32 1.0, %v299_v38 }
 0x49f   : > { %v301_v41 = vmul.f32 %v779_v37, %v300_v39 }
 0x4a1   : > { %v302_v43 = vadd.f32 %v779_v37, %v301_v41 }
 0x4a3   : > { %v306_v45 = vsel %vm305_vm8, %v779_v37, %v302_v43 }
 0x4a4   : > { %v311_v46 = vsel %vm308_vm9, %v310_v44, %v306_v45 }
 0x4a5   : > { %v313_v47 = vmul.f32 %v777_v33, %v311_v46 }
 0x4a7   : > { %673 = vmatmul.msk.f32.vlgmr.msra.gmra.mxu1 %vm264_vm5, %v313_v47  ;;  %346 = vst.msk [vmem:[%s999_s18] sm:$0xff] %vm264_vm5, %v313_v47 }
 0x524   : > { %v337_v48 = vpop.f32.mrf.mxu1 }
 0x525   : > { %341 = vrot.lane.b32.xlu2 %v337_v48, %s889_s30 }
 0x57f   : > { %v342_v49 = vpop.permute.xlu2 %341 }
 0x580   : > { %345 = vst.msk [vmem:[%s997_s17] sm:$0xff] %vm344_vm10, %v342_v49 }
 0x581 PF: > { %p674_p1 = scmp.ne.s32.totalorder %s866_s12, 2 }
 0x582   : > { %s890_s3 = smov (!%p674_p1), 80   ;;  %s891_s4 = smov (!%p674_p1), 112  }
 0x583   : > { %350 = sbr.rel (%p674_p1) target bundleno = 2148 (0x864), region = 36  ;;  %s892_s5 = smov (!%p674_p1), 48  }
 0x584   : > { %s893_s7 = smov (!%p674_p1), 16  }
 0x588   : > { %v351_v50 = vld [vmem:[%s992_s6] sm:$0xff]  ;;  %vm359_vm11 = vcmask 64512   ;;  %vm439_vm0 = vcmask 195712  }
 0x589   : > { %357 = vrot.lane.b32.xlu0 %v351_v50, %s890_s3  ;;  %v352_v51 = vmul.f32 0.35355338, %v351_v50  ;;  %409 = vrot.lane.b32.xlu2 %v351_v50, %s892_s5 }
 0x591   : > { %354 = vrot.lane.b32.xlu0 %v352_v51, %s891_s4 }
 0x5e3   : > { %v410_v61 = vpop.permute.xlu2 %409 }
 0x5e4   : > { %430 = vmatpush.msra.mxu1 %v410_v61 }
 0x5fb   : > { %v358_v52 = vpop.permute.xlu0 %357 }
 0x5fc   : > { %675 = vmatpush.xpose.msk.msra.mxu0 %vm359_vm11, %v358_v52 }
 0x603   : > { %v355_v53 = vpop.permute.xlu0 %354 }
 0x604   : > { %676 = vmatmul.msk.f32.vlgmr.msra.gmra.mxu0 %vm359_vm11, %v355_v53 }
 0x681   : > { %v381_v54 = vpop.f32.mrf.mxu0 }
 0x682   : > { %v384_v55 = vsel %vm359_vm11, %v381_v54, -inf }
 0x683   : > { %385 = vmax.xlane.f32.xlu1 %v384_v55 }
 0x6f6   : > { %v386_v56 = vpop.xlane.xlu1 %385 }
 0x6f7   : > { %v387_v57 = vsub.f32 %v381_v54, %v386_v56 }
 0x6f9   : > { %v388_v58 = vmul.f32 1.442695, %v387_v57 }
 0x6fb   : > { %780 = vpow2.f32 %v388_v58 }
 0x701   : > { %v781_v59 = vpop.eup %780 }
 0x702   : > { %v390_v60 = vsel %vm359_vm11, %v781_v59, 0.0 }
 0x703   : > { %391 = vadd.xlane.f32.xlu1 %v390_v60 }
 0x776   : > { %v392_v62 = vpop.xlane.xlu1 %391 }
 0x777   : > { %782 = vrcp.f32 %v392_v62  ;;  %v404_v2 = vand.u32 2147483648, %v392_v62  ;;  %v402_v4 = vand.u32 2147483647, %v392_v62  ;;  %vm398_vm13 = vweird.f32 %v392_v62 }
 0x779   : > { %v405_v6 = vor.u32 1.1754944e-38, %v404_v2  ;;  %vm403_vm15 = vcmp.eq.f32.partialorder %v402_v4, 8.507059e+37 }
 0x77d   : > { %v783_v63 = vpop.eup %782 }
 0x77e   : > { %v394_v0 = vmul.f32 %v783_v63, %v392_v62  ;;  %vm399_vm12 = vweird.f32 %v783_v63 }
 0x77f   : > { %vm400_vm14 = vmor %vm398_vm13, %vm399_vm12 }
 0x780   : > { %v395_v1 = vsub.f32 1.0, %v394_v0 }
 0x782   : > { %v396_v3 = vmul.f32 %v783_v63, %v395_v1 }
 0x784   : > { %v397_v5 = vadd.f32 %v783_v63, %v396_v3 }
 0x786   : > { %v401_v7 = vsel %vm400_vm14, %v783_v63, %v397_v5 }
 0x787   : > { %v406_v8 = vsel %vm403_vm15, %v405_v6, %v401_v7 }
 0x788   : > { %v408_v9 = vmul.f32 %v781_v59, %v406_v8 }
 0x78a   : > { %677 = vmatmul.msk.f32.vlgmr.msra.gmra.mxu1 %vm359_vm11, %v408_v9  ;;  %441 = vst.msk [vmem:[%s999_s18] sm:$0xff] %vm359_vm11, %v408_v9 }
 0x807   : > { %v432_v10 = vpop.f32.mrf.mxu1 }
 0x808   : > { %436 = vrot.lane.b32.xlu2 %v432_v10, %s893_s7 }
 0x862   : > { %v437_v11 = vpop.permute.xlu2 %436 }
 0x863   : > { %440 = vst.msk [vmem:[%s997_s17] sm:$0xff] %vm439_vm0, %v437_v11 }
 0x864 PF: > { %p678_p2 = scmp.ne.s32.totalorder %s866_s12, 3 }
 0x865   : > { %s894_s8 = smov (!%p678_p2), 72   ;;  %s895_s21 = smov (!%p678_p2), 104  }
 0x866   : > { %445 = sbr.rel (%p678_p2) target bundleno = 2887 (0xb47), region = 40  ;;  %s896_s24 = smov (!%p678_p2), 40  }
 0x86b   : > { %v446_v12 = vld [vmem:[%s992_s6] sm:$0xff]  ;;  %vm454_vm1 = vcmask 64512   ;;  %s897_s6 = smov 24   ;;  %vm534_vm6 = vcmask 261312  }
 0x86c   : > { %452 = vrot.lane.b32.xlu0 %v446_v12, %s894_s8  ;;  %v447_v13 = vmul.f32 0.35355338, %v446_v12  ;;  %504 = vrot.lane.b32.xlu2 %v446_v12, %s896_s24 }
 0x874   : > { %449 = vrot.lane.b32.xlu0 %v447_v13, %s895_s21 }
 0x8c6   : > { %v505_v23 = vpop.permute.xlu2 %504 }
 0x8c7   : > { %525 = vmatpush.msra.mxu1 %v505_v23 }
 0x8de   : > { %v453_v14 = vpop.permute.xlu0 %452 }
 0x8df   : > { %679 = vmatpush.xpose.msk.msra.mxu0 %vm454_vm1, %v453_v14 }
 0x8e6   : > { %v450_v15 = vpop.permute.xlu0 %449 }
 0x8e7   : > { %680 = vmatmul.msk.f32.vlgmr.msra.gmra.mxu0 %vm454_vm1, %v450_v15 }
 0x964   : > { %v476_v16 = vpop.f32.mrf.mxu0 }
 0x965   : > { %v479_v17 = vsel %vm454_vm1, %v476_v16, -inf }
 0x966   : > { %480 = vmax.xlane.f32.xlu1 %v479_v17 }
 0x9d9   : > { %v481_v18 = vpop.xlane.xlu1 %480 }
 0x9da   : > { %v482_v19 = vsub.f32 %v476_v16, %v481_v18 }
 0x9dc   : > { %v483_v20 = vmul.f32 1.442695, %v482_v19 }
 0x9de   : > { %784 = vpow2.f32 %v483_v20 }
 0x9e4   : > { %v785_v21 = vpop.eup %784 }
 0x9e5   : > { %v485_v22 = vsel %vm454_vm1, %v785_v21, 0.0 }
 0x9e6   : > { %486 = vadd.xlane.f32.xlu1 %v485_v22 }
 0xa59   : > { %v487_v24 = vpop.xlane.xlu1 %486 }
 0xa5a   : > { %786 = vrcp.f32 %v487_v24  ;;  %v499_v28 = vand.u32 2147483648, %v487_v24  ;;  %v497_v30 = vand.u32 2147483647, %v487_v24  ;;  %vm493_vm3 = vweird.f32 %v487_v24 }
 0xa5c   : > { %v500_v32 = vor.u32 1.1754944e-38, %v499_v28  ;;  %vm498_vm5 = vcmp.eq.f32.partialorder %v497_v30, 8.507059e+37 }
 0xa60   : > { %v787_v25 = vpop.eup %786 }
 0xa61   : > { %v489_v26 = vmul.f32 %v787_v25, %v487_v24  ;;  %vm494_vm2 = vweird.f32 %v787_v25 }
 0xa62   : > { %vm495_vm4 = vmor %vm493_vm3, %vm494_vm2 }
 0xa63   : > { %v490_v27 = vsub.f32 1.0, %v489_v26 }
 0xa65   : > { %v491_v29 = vmul.f32 %v787_v25, %v490_v27 }
 0xa67   : > { %v492_v31 = vadd.f32 %v787_v25, %v491_v29 }
 0xa69   : > { %v496_v33 = vsel %vm495_vm4, %v787_v25, %v492_v31 }
 0xa6a   : > { %v501_v34 = vsel %vm498_vm5, %v500_v32, %v496_v33 }
 0xa6b   : > { %v503_v35 = vmul.f32 %v785_v21, %v501_v34 }
 0xa6d   : > { %681 = vmatmul.msk.f32.vlgmr.msra.gmra.mxu1 %vm454_vm1, %v503_v35  ;;  %536 = vst.msk [vmem:[%s999_s18] sm:$0xff] %vm454_vm1, %v503_v35 }
 0xaea   : > { %v527_v36 = vpop.f32.mrf.mxu1 }
 0xaeb   : > { %531 = vrot.lane.b32.xlu2 %v527_v36, %s897_s6 }
 0xb45   : > { %v532_v37 = vpop.permute.xlu2 %531 }
 0xb46   : > { %535 = vst.msk [vmem:[%s997_s17] sm:$0xff] %vm534_vm6, %v532_v37 }
 0xb47 PF: > { %s683_s25 = sshll.u32 %s870_s13, 2  ;;  %s559_s29 = sshll.u32 %s999_s18, 4  ;;  %s560_s29 = int_to_ptr.vmem [resolvable:$true] %s559_s29 }
 0xb48   : > { %s555_s26 = sadd.s32 %s866_s12, %s683_s25  ;;  %s542_s8 = scalar_lea.sflag [#allocation3], %s153_s28 }
 0xb49   : > { %s684_s30 = sshll.u32 %s555_s26, 3  ;;  %s808_s18 = scalar_lea.hbm %s1090_s2, 64 }
 0xb4a   : > { %s557_s5 = scalar_lea.hbm %s1090_s2, %s684_s30 }
 0xb4b   : > { %s561_s7 = sshll.u32 %s557_s5, 4  ;;  %s562_s7 = int_to_ptr.hbm [resolvable:$true] %s561_s7 }
 0xb4c   : > { %s802_s17 = sshra.s32 %s562_s7, 4  ;;  %s803_s17 = int_to_ptr.hbm [resolvable:$true] %s802_s17 }
 0xb4d   : > { %s804_s21 = scalar_lea.hbm %s803_s17, 8  ;;  %p809_p7 = scmp.lt.s32.totalorder %s803_s17, %s1090_s2 }
 0xb4e   : > { %p805_p4 = scmp.ne.s32.totalorder %s803_s17, %s804_s21  ;;  %p810_p9 = scmp.lt.s32.totalorder %s808_s18, %s804_s21 }
 0xb50   : > { %p806_p5 = pnand %p805_p4, %p964_p3  ;;  %p811_p10 = por %p810_p9, %p809_p7 }
 0xb52   : > { %p807_p6 = pneg %p806_p5 }
 0xb54   : > { %p812_p11 = pnand %p811_p10, %p807_p6 }
 0xb56   : > { %815 = shalt.err (!%p812_p11)
}
 0xb57   : > { %687 = dma.vmem_to_hbm [thread:$0]  (%p964_p3), %s560_s29, 128, %s562_s7, %s542_s8  }
 0xb58 PF: > { %p693_p12 = scmp.ge.s32.totalorder %s882_s16, 2  ;;  %s580_s28 = sand.u32 1, %s854_s9  }
 0xb59   : > { %s581_s25 = scalar_lea.sflag [#allocation3], %s580_s28 }
 0xb5a   : > { %p690_p13 = pnand %p693_p12, %p973_p8 }
 0xb5c   : > { %p691_p0 = pneg %p690_p13 }
 0xb5e   : > { %849 = dma.done.wait (%p691_p0), %s581_s25, 128  }
 0xb5f   : > { %851 = vsyncadd (%p691_p0), %s581_s25, 4294967168  ;;  %s16_s16 = sadd.s32 1, %s882_s16   ;;  %s1093_s9 = smov %s858_s10 }
 0xb60   : > { %p13_p1 = scmp.ge.s32.totalorder %s16_s16, 10   ;;  %s1094_s10 = smov %s862_s11 }
 0xb61   : > { %s1095_s11 = smov %s982_s27  ;;  %s1096_s12 = smov %s874_s14 }
 0xb62   : > { %s1097_s13 = smov %s878_s15  ;;  %s1098_s14 = smov %s1101_s19 }
 0xb63   : > { %s1099_s15 = smov %s1105_s20  ;;  %15 = sbr.rel (!%p13_p1) target bundleno = 5 (0x5), region = 87 }
 0xb68   :  { %587 = vsyncpa [#allocation3], 1 }
 0xb69   :  { %589 = vsyncpa [#allocation3 + $0x1], 1 }

</bundles_post_ra>
